<compile_context>
chip_gen: v6e
topology: v6e:2x2x1
jax: 0.10.0
libtpu: 0.0.40
codegen_flags: <defaults>
</compile_context>

<pallas_src>
import functools

import numpy as np
import jax
import jax.numpy as jnp
from jax.experimental import pallas as pl
from jax.experimental.pallas import tpu as pltpu


# bf16 operands for the dominant (one-hot x message) MXU stream; accumulation
# stays f32.  Exact for the one-hot; message loses low mantissa bits only.
AGG_MSG_DTYPE = jnp.bfloat16

_VMEM_LIMIT_CACHE = None


def _vmem_limit_bytes():
    """~75% of physical VMEM: leaves Mosaic headroom on v7x (64 MiB) and stops
    throttling v5e/v6e (128 MiB)."""
    global _VMEM_LIMIT_CACHE
    if _VMEM_LIMIT_CACHE is None:
        try:
            cap = int(pltpu.get_tpu_info().vmem_capacity_bytes)
        except Exception:
            cap = 0
        if cap <= 0:
            cap = 64 * 1024 * 1024          # conservative fallback (v7x size)
        _VMEM_LIMIT_CACHE = max(32 * 1024 * 1024, (cap * 3) // 4)
    return _VMEM_LIMIT_CACHE


def _round_up(x, m):
    return ((x + m - 1) // m) * m


# --------------------------- row-tiled linear --------------------------------

def _linear_kernel(x_ref, w_ref, b_ref, o_ref, *, act, mxu_dtype):
    x = x_ref[...].astype(mxu_dtype)
    w = w_ref[...].astype(mxu_dtype)
    y = jnp.dot(x, w, preferred_element_type=jnp.float32) + b_ref[...]
    if act == "relu":
        y = jnp.maximum(y, 0.0)
    o_ref[...] = y


def pallas_linear(x, w, b, act="none", tile_m=256, mxu_dtype=jnp.float32):
    # Lane-dense output: pad the output width to a multiple of 128 so stores
    # are unmasked full-vreg vst's; slice the zero padding off afterwards.
    # mxu_dtype=jnp.bfloat16 gives ~2x MXU rate on v6e and avoids the f32
    # multi-pass penalty on v5e (kept f32 here for exactness of this test).
    M, K = x.shape
    _, N = w.shape
    assert M % tile_m == 0
    Np = _round_up(N, 128)
    w_p = jnp.pad(w.astype(jnp.float32), ((0, 0), (0, Np - N)))
    b_p = jnp.pad(b.astype(jnp.float32).reshape(1, N), ((0, 0), (0, Np - N)))
    out = pl.pallas_call(
        functools.partial(_linear_kernel, act=act, mxu_dtype=mxu_dtype),
        out_shape=jax.ShapeDtypeStruct((M, Np), jnp.float32),
        grid=(M // tile_m,),
        in_specs=[
            pl.BlockSpec((tile_m, K), lambda i: (i, 0)),
            pl.BlockSpec((K, Np), lambda i: (0, 0)),
            pl.BlockSpec((1, Np), lambda i: (0, 0)),
        ],
        out_specs=pl.BlockSpec((tile_m, Np), lambda i: (i, 0)),
        compiler_params=pltpu.CompilerParams(
            dimension_semantics=("parallel",),
            vmem_limit_bytes=_vmem_limit_bytes()),
    )(x.astype(jnp.float32), w_p, b_p)
    return out[:, :N]


# -------- fused edge encoder + edge attention, edge-major (E, H) layout ------

def _edge_attn_kernel(ef_ref, asrc_ref, adst_ref, mask_ref, we_ref, be_ref,
                      wa_ref, o_ref, *, slope):
    # ee = relu(efeat @ We + be)                      (TE, Eemb)
    ee = jnp.dot(ef_ref[...], we_ref[...], preferred_element_type=jnp.float32)
    ee = jnp.maximum(ee + be_ref[...], 0.0)
    # e = ee @ Wa + attn_src[src] + attn_dst[dst]     (TE, H)
    e = jnp.dot(ee, wa_ref[...], preferred_element_type=jnp.float32)
    e = e + asrc_ref[...] + adst_ref[...]
    a = jnp.where(e > 0, e, slope * e)
    o_ref[...] = a * mask_ref[...]            # zero the padded edges


def pallas_edge_attn(efeat, asrc, adst, mask, we, be, wa, *, slope, tile_e):
    E_pad, De = efeat.shape
    Eemb = we.shape[1]
    H = wa.shape[1]
    assert E_pad % tile_e == 0
    return pl.pallas_call(
        functools.partial(_edge_attn_kernel, slope=slope),
        out_shape=jax.ShapeDtypeStruct((E_pad, H), jnp.float32),
        grid=(E_pad // tile_e,),
        in_specs=[
            pl.BlockSpec((tile_e, De), lambda i: (i, 0)),
            pl.BlockSpec((tile_e, H), lambda i: (i, 0)),
            pl.BlockSpec((tile_e, H), lambda i: (i, 0)),
            pl.BlockSpec((tile_e, 1), lambda i: (i, 0)),
            pl.BlockSpec((De, Eemb), lambda i: (0, 0)),
            pl.BlockSpec((1, Eemb), lambda i: (0, 0)),
            pl.BlockSpec((Eemb, H), lambda i: (0, 0)),
        ],
        out_specs=pl.BlockSpec((tile_e, H), lambda i: (i, 0)),
        compiler_params=pltpu.CompilerParams(
            dimension_semantics=("parallel",),
            vmem_limit_bytes=_vmem_limit_bytes()),
    )(efeat, asrc, adst, mask,
      we.astype(jnp.float32), be.reshape(1, Eemb).astype(jnp.float32),
      wa.astype(jnp.float32))


# ---- sparse dst-sorted aggregation + fused layer tail (norm/agg_fc/BN/ReLU) --

def _agg_kernel(fb_ref, nb_ref, dst_ref, msg_ref, dstout_ref, *rest,
                tile_n, n_heads, out_feats, has_residual):
    if has_residual:
        (res_ref, scale_ref, offset_ref, wagg_ref, bagg_ref,
         bns_ref, bnt_ref, pre_ref, post_ref, acc_ref) = rest
    else:
        res_ref = None
        (scale_ref, offset_ref, wagg_ref, bagg_ref,
         bns_ref, bnt_ref, pre_ref, post_ref, acc_ref) = rest

    t = pl.program_id(0)
    b = pl.program_id(1)
    H, F = n_heads, out_feats

    @pl.when(b == 0)
    def _init():
        acc_ref[...] = jnp.zeros_like(acc_ref)

    # One lane-dense MXU matmul per edge block: (TN, TE) one-hot x (TE, HF)
    # attention-pre-scaled messages; padded edges have zero messages.
    @pl.when(b < nb_ref[t])
    def _accumulate():
        dst_row = dst_ref[...]                                 # (1, TE) int32
        tile_e = dst_row.shape[1]
        row_ids = t * tile_n + jax.lax.broadcasted_iota(
            jnp.int32, (tile_n, tile_e), 0)
        hit = (row_ids == dst_row).astype(msg_ref.dtype)       # exact in bf16
        acc_ref[...] += jnp.dot(hit, msg_ref[...],
                                preferred_element_type=jnp.float32)

    # Fused layer tail: per-head normalization, single K=HF agg_fc matmul,
    # dst_fc add, residual add, BatchNorm(eval) + ReLU.
    @pl.when(b == pl.num_programs(1) - 1)
    def _finalize():
        acc = acc_ref[...]                                     # (TN, HF)
        parts = []
        for h in range(H):
            a_h = acc[:, h * F:(h + 1) * F]
            mean = jnp.mean(a_h, axis=-1, keepdims=True)
            var = jnp.mean((a_h - mean) ** 2, axis=-1, keepdims=True) + 1e-9
            parts.append((a_h - mean) * scale_ref[h:h + 1, :]
                         * jax.lax.rsqrt(var) + offset_ref[h:h + 1, :])
        nrm = jnp.concatenate(parts, axis=1)                   # (TN, HF)
        agg_out = jnp.dot(nrm, wagg_ref[...],
                          preferred_element_type=jnp.float32)
        pre = agg_out + bagg_ref[...] + dstout_ref[...]
        if has_residual:
            pre = pre + res_ref[...]
        pre_ref[...] = pre
        post_ref[...] = jnp.maximum(pre * bns_ref[...] + bnt_ref[...], 0.0)


def pallas_aggregate_layer(first_blk, nblk, dst_ids_2d, msg, dst_out, residual,
                           scale, offset, w_agg, b_agg, bn_scale, bn_shift, *,
                           tile_n, tile_e, n_heads, out_feats,
                           max_blocks_per_tile):
    N_pad, HF = dst_out.shape
    H, F = n_heads, out_feats
    T = N_pad // tile_n
    has_residual = residual is not None

    def edge_block(t, b, fb, nb):
        # Freeze the block index once this tile's blocks are exhausted so the
        # pipeline stops DMAing fresh (discarded) edge blocks on padded steps.
        return fb[t] + jnp.minimum(b, jnp.maximum(nb[t] - 1, 0))

    def dst_map(t, b, fb, nb):
        return (0, edge_block(t, b, fb, nb))

    def msg_map(t, b, fb, nb):
        return (edge_block(t, b, fb, nb), 0)

    def node_map(t, b, fb, nb):
        return (t, 0)

    def const_map(t, b, fb, nb):
        return (0, 0)

    in_specs = [
        pl.BlockSpec((1, tile_e), dst_map),       # sorted dst ids
        pl.BlockSpec((tile_e, HF), msg_map),      # attention-scaled messages
        pl.BlockSpec((tile_n, HF), node_map),     # dst_fc output
    ]
    args = [dst_ids_2d, msg, dst_out]
    if has_residual:
        in_specs.append(pl.BlockSpec((tile_n, HF), node_map))   # residual
        args.append(residual)
    in_specs += [
        pl.BlockSpec((H, F), const_map),          # conv.scale
        pl.BlockSpec((H, F), const_map),          # conv.offset
        pl.BlockSpec((HF, HF), const_map),        # agg_fc weight
        pl.BlockSpec((1, HF), const_map),         # agg_fc bias
        pl.BlockSpec((1, HF), const_map),         # folded BN scale
        pl.BlockSpec((1, HF), const_map),         # folded BN shift
    ]
    args += [scale, offset, w_agg, b_agg, bn_scale, bn_shift]

    grid_spec = pltpu.PrefetchScalarGridSpec(
        num_scalar_prefetch=2,
        grid=(T, max_blocks_per_tile),
        in_specs=in_specs,
        out_specs=[pl.BlockSpec((tile_n, HF), node_map),
                   pl.BlockSpec((tile_n, HF), node_map)],
        scratch_shapes=[pltpu.VMEM((tile_n, HF), jnp.float32)],
    )

    flops = (2 * T * max_blocks_per_tile * tile_n * tile_e * HF
             + 2 * N_pad * HF * HF)
    bytes_accessed = (T * max_blocks_per_tile * tile_e
                      * (4 + HF * msg.dtype.itemsize)
                      + (5 if has_residual else 4) * N_pad * HF * 4)
    kern = functools.partial(_agg_kernel, tile_n=tile_n, n_heads=H,
                             out_feats=F, has_residual=has_residual)
    return pl.pallas_call(
        kern,
        grid_spec=grid_spec,
        out_shape=(jax.ShapeDtypeStruct((N_pad, HF), jnp.float32),
                   jax.ShapeDtypeStruct((N_pad, HF), jnp.float32)),
        compiler_params=pltpu.CompilerParams(
            dimension_semantics=("parallel", "arbitrary"),
            vmem_limit_bytes=_vmem_limit_bytes()),
        cost_estimate=pl.CostEstimate(flops=int(flops), transcendentals=0,
                                      bytes_accessed=int(bytes_accessed)),
    )(first_blk, nblk, *args)


# ----------------------------- parameters -----------------------------------

def init_params(key, node_feats, edge_feats, n_classes, n_layers, n_heads,
                n_hidden, edge_emb, first_hidden):
    H, F = n_heads, n_hidden
    keys = iter(jax.random.split(key, 4 + 10 * n_layers))

    def nrm(shape, scale=0.1):
        return scale * jax.random.normal(next(keys), shape, jnp.float32)

    params = {
        "node_encoder_w": nrm((node_feats, first_hidden)),
        "node_encoder_b": nrm((first_hidden,)),
        "pred_w": nrm((H * F, n_classes)),
        "pred_b": nrm((n_classes,)),
        "layers": [],
    }
    for i in range(n_layers):
        in_hidden = first_hidden if i == 0 else H * F
        params["layers"].append({
            "edge_enc_w": nrm((edge_feats, edge_emb)),
            "edge_enc_b": nrm((edge_emb,)),
            "src_fc_w": nrm((in_hidden, H * F)),       # no bias
            "attn_src_w": nrm((in_hidden, H)),         # no bias
            "attn_dst_w": nrm((in_hidden, H)),         # no bias
            "attn_edge_w": nrm((edge_emb, H)),         # no bias
            "scale": jnp.ones((1, H, F), jnp.float32),
            "offset": jnp.zeros((1, H, F), jnp.float32),
            "agg_fc_w": nrm((H * F, H * F)),
            "agg_fc_b": nrm((H * F,)),
            "dst_fc_w": nrm((in_hidden, H * F)),
            "dst_fc_b": nrm((H * F,)),
            "bn_gamma": jnp.ones((H * F,), jnp.float32),
            "bn_beta": jnp.zeros((H * F,), jnp.float32),
            "bn_mean": jnp.zeros((H * F,), jnp.float32),
            "bn_var": jnp.ones((H * F,), jnp.float32),
        })
    return params


# ----------------------------- forward pass ----------------------------------

def gipa_wide_forward(params, x, efeat, src_ids, dst_ids, *, n_layers, n_heads,
                      n_hidden, node_tile=512, edge_tile=1024):
    N = x.shape[0]
    E = src_ids.shape[0]
    H, F = n_heads, n_hidden
    HF = H * F

    node_tile = _round_up(node_tile, 8)
    edge_tile = _round_up(edge_tile, 128)
    tile_n = min(node_tile, _round_up(N, 8))
    N_pad = _round_up(N, tile_n)
    tile_e = min(edge_tile, _round_up(E, 128))
    E_pad = _round_up(E, tile_e)
    T = N_pad // tile_n

    x_p = jnp.pad(x.astype(jnp.float32), ((0, N_pad - N), (0, 0)))

    # ---- graph preprocessing (glue, done once; the graph is layer-invariant) -
    perm = jnp.argsort(dst_ids)
    src_s = src_ids[perm]
    dst_s = dst_ids[perm]
    efeat_s = efeat[perm].astype(jnp.float32)

    pad_e = E_pad - E
    src_sp = jnp.pad(src_s, (0, pad_e))
    # Padded edges get a sentinel dst id (never matches a real row) AND zero
    # attention via edge_mask — double protection for the scatter.
    dst_sp = jnp.pad(dst_s, (0, pad_e), constant_values=N_pad)
    efeat_sp = jnp.pad(efeat_s, ((0, pad_e), (0, 0)))
    dst_2d = dst_sp.astype(jnp.int32).reshape(1, E_pad)
    edge_mask = (jnp.arange(E_pad) < E).astype(jnp.float32).reshape(E_pad, 1)

    # Per-dst-tile edge-block ranges for the scalar-prefetched index maps.
    # TODO(synk): host-side offset computation needs concrete edge ids (no jit
    # over this wrapper); under jit, pass first_blk/nblk in as inputs instead.
    dst_np = np.asarray(dst_s)
    counts = np.bincount(dst_np // tile_n, minlength=T).astype(np.int64)
    ends = np.cumsum(counts)
    starts = ends - counts
    first_blk = np.where(counts > 0, starts // tile_e, 0).astype(np.int32)
    last_blk = np.where(counts > 0, (ends - 1) // tile_e, 0).astype(np.int32)
    nblk = np.where(counts > 0, last_blk - first_blk + 1, 0).astype(np.int32)
    max_blocks = int(max(1, int(nblk.max())))
    first_blk = jnp.asarray(first_blk)
    nblk = jnp.asarray(nblk)

    # Edge-attention kernel is bandwidth/step-overhead bound: use one big
    # lane/sublane-dense tile when it fits, else fall back to the agg tile.
    tile_ea = E_pad if E_pad <= 4096 else tile_e

    # node_encoder + relu (input/first-layer norms disabled; dropouts identity)
    h = pallas_linear(x_p, params["node_encoder_w"], params["node_encoder_b"],
                      act="relu", tile_m=tile_n)

    h_last = None
    for i in range(n_layers):
        p = params["layers"][i]

        # Fused, row-tiled, lane-dense matmul:
        # [src_fc | dst_fc | attn_src | attn_dst]  (output padded to 128 lanes)
        w_cat = jnp.concatenate(
            [p["src_fc_w"], p["dst_fc_w"], p["attn_src_w"], p["attn_dst_w"]],
            axis=1)
        b_cat = jnp.concatenate(
            [jnp.zeros((HF,), jnp.float32), p["dst_fc_b"],
             jnp.zeros((2 * H,), jnp.float32)])
        proj = pallas_linear(h, w_cat, b_cat, tile_m=tile_n)
        fsrc = proj[:, :HF]
        dst_out = proj[:, HF:2 * HF]
        a_src = proj[:, 2 * HF:2 * HF + H]
        a_dst = proj[:, 2 * HF + H:2 * HF + 2 * H]

        # Per-edge attention in edge-major (E, H) layout: plain row gathers of
        # attn_src/attn_dst (no transposes); fuses edge_encoder, relu,
        # attn_edge_fc, u_add_v, leaky_relu and the pad mask.
        attn = pallas_edge_attn(efeat_sp, a_src[src_sp], a_dst[dst_sp],
                                edge_mask, p["edge_enc_w"], p["edge_enc_b"],
                                p["attn_edge_w"], slope=0.2, tile_e=tile_ea)

        # Attention-pre-scaled messages in bf16 (XLA fuses the scale into the
        # gather epilogue); padded edges have attn==0 -> zero message rows.
        # TODO(synk): replace with an in-kernel make_async_copy row gather of
        # fsrc (memory_space=pl.ANY) to avoid the (E, HF) HBM round trip.
        msg = (fsrc[src_sp].reshape(E_pad, H, F) * attn[:, :, None]
               ).reshape(E_pad, HF).astype(AGG_MSG_DTYPE)

        bn_s = p["bn_gamma"] * jax.lax.rsqrt(p["bn_var"] + 1e-5)
        bn_scale = bn_s.reshape(1, HF)
        bn_shift = (p["bn_beta"] - p["bn_mean"] * bn_s).reshape(1, HF)

        pre, post = pallas_aggregate_layer(
            first_blk, nblk, dst_2d, msg, dst_out, h_last,
            p["scale"].reshape(H, F), p["offset"].reshape(H, F),
            p["agg_fc_w"], p["agg_fc_b"].reshape(1, HF), bn_scale, bn_shift,
            tile_n=tile_n, tile_e=tile_e, n_heads=H, out_feats=F,
            max_blocks_per_tile=max_blocks)
        h_last = pre
        h = post

    out = pallas_linear(h, params["pred_w"], params["pred_b"], tile_m=tile_n)
    return out[:N]


# ---------------------- pure-JAX reference (correctness) ---------------------

def reference_forward(params, x, efeat, src_ids, dst_ids, *, n_layers, n_heads,
                      n_hidden):
    N = x.shape[0]
    H, F = n_heads, n_hidden
    h = jax.nn.relu(x @ params["node_encoder_w"] + params["node_encoder_b"])
    h_last = None
    for i in range(n_layers):
        p = params["layers"][i]
        ee = jax.nn.relu(efeat @ p["edge_enc_w"] + p["edge_enc_b"])
        fsrc = (h @ p["src_fc_w"]).reshape(N, H, F)
        a_src = h @ p["attn_src_w"]
        a_dst = h @ p["attn_dst_w"]
        a_edge = ee @ p["attn_edge_w"]
        e = a_src[src_ids] + a_dst[dst_ids] + a_edge
        a = jnp.where(e > 0, e, 0.2 * e)
        msg = a[:, :, None] * fsrc[src_ids]
        agg = jnp.zeros((N, H, F), jnp.float32).at[dst_ids].add(msg)
        mean = agg.mean(-1, keepdims=True)
        var = ((agg - mean) ** 2).mean(-1, keepdims=True) + 1e-9
        nrm = (agg - mean) * p["scale"] * jax.lax.rsqrt(var) + p["offset"]
        agg_out = nrm.reshape(N, H * F) @ p["agg_fc_w"] + p["agg_fc_b"]
        dst_out = h @ p["dst_fc_w"] + p["dst_fc_b"]
        rst = agg_out + dst_out
        if h_last is not None:
            rst = rst + h_last
        h_last = rst
        y = ((rst - p["bn_mean"]) * jax.lax.rsqrt(p["bn_var"] + 1e-5)
             * p["bn_gamma"] + p["bn_beta"])
        h = jax.nn.relu(y)
    return h @ params["pred_w"] + params["pred_b"]


# --------------------------------- main ---------------------------------------

if __name__ == "__main__":
    NODE_FEATS, EDGE_FEATS = 8, 6
    N_CLASSES, N_LAYERS, N_HEADS, N_HIDDEN = 4, 2, 2, 8
    EDGE_EMB, FIRST_HIDDEN = 4, 16
    N_NODES, N_EDGES = 48, 300   # exercises multiple dst tiles and edge blocks

    key = jax.random.PRNGKey(0)
    k_params, k_x, k_e, k_s, k_d = jax.random.split(key, 5)

    params = init_params(k_params, NODE_FEATS, EDGE_FEATS, N_CLASSES, N_LAYERS,
                         N_HEADS, N_HIDDEN, EDGE_EMB, FIRST_HIDDEN)
    x = jax.random.normal(k_x, (N_NODES, NODE_FEATS), jnp.float32)
    efeat = jax.random.normal(k_e, (N_EDGES, EDGE_FEATS), jnp.float32)
    src_ids = jax.random.randint(k_s, (N_EDGES,), 0, N_NODES)
    dst_ids = jax.random.randint(k_d, (N_EDGES,), 0, N_NODES)

    out = gipa_wide_forward(params, x, efeat, src_ids, dst_ids,
                            n_layers=N_LAYERS, n_heads=N_HEADS,
                            n_hidden=N_HIDDEN, node_tile=16, edge_tile=128)
    out = jax.block_until_ready(out)

    ref = reference_forward(params, x, efeat, src_ids, dst_ids,
                            n_layers=N_LAYERS, n_heads=N_HEADS,
                            n_hidden=N_HIDDEN)

    assert out.shape == (N_NODES, N_CLASSES)
    # 2e-2 tolerance accommodates the bf16 message/one-hot MXU path (f32 acc)
    # and the different (tile-ordered) f32 accumulation order.
    assert bool(jnp.allclose(out, ref, atol=2e-2, rtol=2e-2))
    print("KERNEL_OK")
</pallas_src>

<mosaic_0001>
module attributes {stable_mosaic.version = 11 : i64} {
  func.func @_linear_kernel(%arg0: i32, %arg1: memref<16x8xf32, #tpu.memory_space<vmem>>, %arg2: memref<8x128xf32, #tpu.memory_space<vmem>>, %arg3: memref<1x128xf32, #tpu.memory_space<vmem>>, %arg4: memref<16x128xf32, #tpu.memory_space<vmem>>) attributes {dimension_semantics = [#tpu.dimension_semantics<parallel>], iteration_bounds = array<i64: 3>, scalar_prefetch = 0 : i64, scratch_operands = 0 : i64, tpu.core_type = #tpu.core_type<tc>, window_params = [{transform_indices = @transform_0, window_bounds = array<i64: 16, 8>}, {pipeline_mode = #tpu.pipeline_mode<synchronous>, transform_indices = @transform_1, window_bounds = array<i64: 8, 128>}, {pipeline_mode = #tpu.pipeline_mode<synchronous>, transform_indices = @transform_2, window_bounds = array<i64: 1, 128>}, {transform_indices = @transform_3, window_bounds = array<i64: 16, 128>}]} {
    %c0 = arith.constant 0 : index
    %c0_0 = arith.constant 0 : index
    %0 = vector.load %arg1[%c0, %c0_0] : memref<16x8xf32, #tpu.memory_space<vmem>>, vector<16x8xf32>
    %c0_1 = arith.constant 0 : index
    %c0_2 = arith.constant 0 : index
    %1 = vector.load %arg2[%c0_1, %c0_2] : memref<8x128xf32, #tpu.memory_space<vmem>>, vector<8x128xf32>
    %cst = arith.constant dense<0.000000e+00> : vector<16x128xf32>
    %2 = tpu.matmul %0, %1, %cst {dimension_numbers = #tpu.dot_dimension_numbers<[1], [0], [0], [1], [0, 0, 1, 1], [], []>} : vector<16x8xf32>, vector<8x128xf32>, vector<16x128xf32> -> vector<16x128xf32>
    %c0_3 = arith.constant 0 : index
    %c0_4 = arith.constant 0 : index
    %3 = vector.load %arg3[%c0_3, %c0_4] : memref<1x128xf32, #tpu.memory_space<vmem>>, vector<1x128xf32>
    %4 = vector.broadcast %3 : vector<1x128xf32> to vector<16x128xf32>
    %5 = arith.addf %2, %4 : vector<16x128xf32>
    %cst_5 = arith.constant 0.000000e+00 : f32
    %6 = vector.broadcast %cst_5 : f32 to vector<16x128xf32>
    %7 = arith.maximumf %5, %6 : vector<16x128xf32>
    %c0_6 = arith.constant 0 : index
    %c0_7 = arith.constant 0 : index
    %8 = vector.load %arg4[%c0_6, %c0_7] : memref<16x128xf32, #tpu.memory_space<vmem>>, vector<16x128xf32>
    tpu.vector_store %arg4[%c0_6, %c0_7], %7 {strides = array<i32>} : memref<16x128xf32, #tpu.memory_space<vmem>>, vector<16x128xf32>,
    return
  }
  func.func @transform_0(%arg0: i32) -> (i32, i32) {
    %c0_i32 = arith.constant 0 : i32
    %c0_i32_0 = arith.constant 0 : i32
    return %arg0, %c0_i32 : i32, i32
  }
  func.func @transform_1(%arg0: i32) -> (i32, i32) {
    %c0_i32 = arith.constant 0 : i32
    %c0_i32_0 = arith.constant 0 : i32
    %c0_i32_1 = arith.constant 0 : i32
    return %c0_i32, %c0_i32_0 : i32, i32
  }
  func.func @transform_2(%arg0: i32) -> (i32, i32) {
    %c0_i32 = arith.constant 0 : i32
    %c0_i32_0 = arith.constant 0 : i32
    %c0_i32_1 = arith.constant 0 : i32
    return %c0_i32, %c0_i32_0 : i32, i32
  }
  func.func @transform_3(%arg0: i32) -> (i32, i32) {
    %c0_i32 = arith.constant 0 : i32
    %c0_i32_0 = arith.constant 0 : i32
    return %arg0, %c0_i32 : i32, i32
  }
}

</mosaic_0001>

<bundles_post_ra>
// kernel: tpu_custom_call.1
= control target key start
LH: loop header
LB: loop body
LE: loop exit
PB: predicated region body
PF: predicated region fallthrough
CT: control target
= control target key end

     0   :  { %8 = vsyncpa [#allocation3], 0  ;;  %s601_s0 = inlined_call_operand.vmem [shape: f32[48,8], index: 0, kind: input, shape index: {}]   ;;  %s602_s1 = inlined_call_operand.vmem [shape: f32[8,128], index: 1, kind: input, shape index: {}]   ;;  %s603_s2 = inlined_call_operand.vmem [shape: f32[1,128], index: 2, kind: input, shape index: {}]   ;;  %s604_s3 = inlined_call_operand.hbm [shape: f32[48,128], index: 3, kind: output, shape index: {}]  }
   0x1   :  { %10 = vsyncpa [#allocation3 + $0x1], 0  ;;  %s494_s12 = smov 0   ;;  %s496_s13 = smov 0  }
   0x2   :  { %s498_s14 = smov 0   ;;  %s500_s15 = smov 0  }
   0x3 LB: > { %s515_s16 = sadd.s32 4294967295, %s469_s15   ;;  %s344_s17 = sadd.s32 4294967294, %s469_s15   ;;  %s469_s15 = sphi %s500_s15, %s610_s15   ;;  %s465_s14 = sphi %s498_s14, %s609_s14   ;;  %s461_s13 = sphi %s496_s13, %s608_s13   ;;  %s457_s12 = sphi %s494_s12, %s607_s12  }
   0x4   : > { %s519_s18 = sadd.s32 1, %s469_s15   ;;  %s91_s19 = sadd.s32 1, %s465_s14 }
   0x5   : > { %s88_s20 = ssub.s32 %s469_s15, %s519_s18  ;;  %p101_p0 = scmp.ne.s32.totalorder %s465_s14, %s461_s13 }
   0x6   : > { %p89_p1 = scmp.eq.s32.totalorder %s88_s20, 0  ;;  %p102_p2 = scmp.eq.s32.totalorder %s515_s16, 2 }
   0x7   : > { %p107_p3 = scmp.ne.s32.totalorder %s461_s13, %s457_s12  ;;  %p108_p4 = scmp.eq.s32.totalorder %s344_s17, 2 }
   0x8   : > { %s530_s21 = scalar_select %p89_p1, %s465_s14, %s91_s19  }
   0x9   : > { %p532_p5 = por %p102_p2, %p101_p0  ;;  %p536_p6 = por %p108_p4, %p107_p3 }
   0xa   : > { %p347_p7 = scmp.ge.s32.totalorder %s469_s15, 1  ;;  %p141_p8 = scmp.lt.s32.totalorder %s469_s15, 4 }
   0xc   : > { %p142_p9 = pnand %p347_p7, %p141_p8 }
   0xd   : > { %s349_s26 = sshll.u32 (!%p142_p9), %s515_s16, 1  ;;  %s162_s4 = sand.u32 (!%p142_p9), 1, %s461_s13  }
   0xe   : > { %145 = sbr.rel (%p142_p9) target bundleno = 237 (0xed), region = 32  ;;  %p166_p10 = scmp.lt.s32.totalorder (!%p142_p9), %s349_s26, 5 }
   0xf   : > { %s348_s5 = sshll.u32 (!%p142_p9), %s162_s4, 4  ;;  %s359_s10 = sshll.u32 (!%p142_p9), %s515_s16, 8 }
  0x10   : > { %s164_s8 = scalar_lea.vmem (!%p142_p9), [#allocation2], %s348_s5  ;;  %s559_s19 = scalar_lea.hbm (!%p142_p9), %s604_s3, %s359_s10 }
  0x11   : > { %s282_s9 = sshll.u32 (!%p142_p9), %s164_s8, 4  ;;  %s561_s20 = scalar_lea.sflag (!%p142_p9), [#allocation3], %s162_s4  ;;  %s554_s9 = int_to_ptr.vmem [resolvable:$true] %s282_s9 }
  0x12   : > { %s409_s24 = scalar_lea.vmem (!%p142_p9), %s554_s9, 256  ;;  %s471_s16 = smov (!%p142_p9), [#allocation2]  }
  0x13   : > { %v174_v0 = vld [vmem:[%s602_s1] sm:$0xff]  ;;  %s612_s26 = smov (!%p166_p10, %s349_s26), 5  ;;  %vm182_vm0 = vcmask 64512   ;;  %p410_p11 = scmp.ne.s32.totalorder %s554_s9, %s409_s24 }
  0x14   : > { %363 = vmatprep.subr.mxu0 %v174_v0  ;;  %s350_s27 = sshll.u32 %s612_s26, 3  ;;  %v351_v3 = vld [vmem:[%s603_s2] ss:$0 sm:$0xff]  ;;  %s413_s25 = sshll.u32 %s471_s16, 4  ;;  %s414_s25 = int_to_ptr.vmem [resolvable:$false] %s413_s25 }
  0x15   : > { %364 = vmatpush3.msra.mxu0 %v174_v0  ;;  %s169_s30 = scalar_lea.vmem %s601_s0, %s350_s27  ;;  %p411_p12 = pnand %p410_p11, %p532_p5 }
  0x16   : > { %v172_v1 = vld [vmem:[%s169_s30] sm:$0xff]  ;;  %v173_v2 = vld [vmem:[%s169_s30 + $0x8] sm:$0xff]  ;;  %s415_s26 = scalar_lea.vmem %s414_s25, 512  ;;  %p416_p0 = scmp.lt.s32.totalorder %s554_s9, %s414_s25 }
  0x17   : > { %365 = vmatprep.mubr.msk.f32.mxu0 %vm182_vm0, %v172_v1  ;;  %p412_p13 = pneg %p411_p12  ;;  %p417_p1 = scmp.lt.s32.totalorder %s415_s26, %s409_s24 }
  0x18   : > { %366 = vmatmul.mubr.msk.f32.vlgmr.msra.gmra.mxu0 %vm182_vm0, %v173_v2 }
  0x19   : > { %p418_p2 = por %p417_p1, %p416_p0 }
  0x1b   : > { %p419_p3 = pnand %p418_p2, %p412_p13 }
  0xd8   : > { %v367_v4 = vpop.f32.mrf.mxu0 }
  0xd9   : > { %v261_v5 = vadd.f32 %v367_v4, %v351_v3 }
  0xda   : > { %v255_v6 = vpop.f32.mrf.mxu0 }
  0xdb   : > { %v265_v7 = vmax.f32 %v261_v5, 0.0  ;;  %v256_v8 = vadd.f32 %v351_v3, %v255_v6 }
  0xdd   : > { %267 = vst [vmem:[%s164_s8 + $0x8] sm:$0xff] %v265_v7  ;;  %v264_v9 = vmax.f32 %v256_v8, 0.0 }
  0xdf   : > { %266 = vst [vmem:[%s164_s8] sm:$0xff] %v264_v9 }
  0xe0   : > { %422 = shalt.err (!%p419_p3)
}
  0xe1   : > { %s423_s27 = scalar_lea.hbm %s559_s19, 256  ;;  %s427_s30 = scalar_lea.hbm %s604_s3, 768 }
  0xe2   : > { %p424_p4 = scmp.ne.s32.totalorder %s559_s19, %s423_s27  ;;  %p428_p9 = scmp.lt.s32.totalorder %s559_s19, %s604_s3 }
  0xe3   : > { %p429_p10 = scmp.lt.s32.totalorder %s427_s30, %s423_s27 }
  0xe4   : > { %p425_p7 = pnand %p424_p4, %p532_p5 }
  0xe5   : > { %p430_p11 = por %p429_p10, %p428_p9 }
  0xe6   : > { %p426_p8 = pneg %p425_p7 }
  0xe8   : > { %p431_p12 = pnand %p430_p11, %p426_p8 }
  0xea   : > { %434 = shalt.err (!%p431_p12)
}
  0xeb   : > { %s472_s6 = smov 128   ;;  %s473_s7 = smov 8  }
  0xec   : > { %368 = dma.vmem_to_hbm [thread:$0]  (%p532_p5), %s554_s9, 256, %s559_s19, %s561_s20, %s472_s6, %s472_s6, %s473_s7  }
  0xed PF: > { %p374_p13 = scmp.ge.s32.totalorder %s469_s15, 2  ;;  %s297_s8 = sand.u32 1, %s457_s12  }
  0xee   : > { %s298_s10 = scalar_lea.sflag [#allocation3], %s297_s8 }
  0xef   : > { %p371_p0 = pnand %p374_p13, %p536_p6 }
  0xf1   : > { %p372_p1 = pneg %p371_p0 }
  0xf3   : > { %452 = dma.done.wait (%p372_p1), %s298_s10, 256  }
  0xf4   : > { %454 = vsyncadd (%p372_p1), %s298_s10, 4294967040  ;;  %p13_p2 = scmp.ge.s32.totalorder %s519_s18, 5   ;;  %s607_s12 = smov %s461_s13 }
  0xf5   : > { %s608_s13 = smov %s465_s14  ;;  %s609_s14 = smov %s530_s21 }
  0xf6   : > { %s610_s15 = smov %s519_s18  ;;  %15 = sbr.rel (!%p13_p2) target bundleno = 3 (0x3), region = 67 }
  0xfb   :  { %303 = vsyncpa [#allocation3], 1 }
  0xfc   :  { %305 = vsyncpa [#allocation3 + $0x1], 1 }

</bundles_post_ra>
